<compile_context>
chip_gen: v7x
topology: tpu7x:2x2x1
jax: 0.10.0
libtpu: 0.0.40
codegen_flags: <defaults>
</compile_context>

<pallas_src>
import functools

import jax
import jax.numpy as jnp
from jax.experimental import pallas as pl
from jax.experimental.pallas import tpu as pltpu


def _avgpool_kernel(x_ref, s_ref, o_ref, *, inv_area):
    # x_ref: (Rblk, kh*W)   -- one window band per row
    # s_ref: (kh*W, Wo)     -- 0/1 column-selection matrix (resident)
    # o_ref: (Rblk, Wo)
    acc = jnp.dot(x_ref[...], s_ref[...], preferred_element_type=jnp.float32)
    o_ref[...] = (acc * inv_area).astype(o_ref.dtype)


def avg_pool2d_ext_forward(x_btchw, kernel_size=2, *, row_block=512):
    """Equivalent of AvgPool2DExt.forward with AvgPool2d(kernel_size).

    x_btchw: (B, T, C, H, W)
    returns: (B, T, C, H//kh, W//kw)
    """
    # TODO(synk): general AvgPool2d configs (stride != kernel_size, padding > 0,
    # ceil_mode=True, count_include_pad, divisor_override) are not implemented.
    if isinstance(kernel_size, (tuple, list)):
        kh, kw = int(kernel_size[0]), int(kernel_size[1])
    else:
        kh = kw = int(kernel_size)

    B, T, C, H, W = x_btchw.shape
    assert H >= kh and W >= kw, "pooling window larger than input"
    Ho, Wo = H // kh, W // kw

    # PyTorch floor behaviour: trailing rows/cols that don't fill a window drop.
    x = x_btchw[..., : Ho * kh, : Wo * kw]
    Wi = Wo * kw

    # Free contiguous reshape: row r = (((b*T+t)*C+c)*Ho+ho) holds the
    # (kh, Wi) band of input feeding output row (b, t, c, ho), flattened.
    rows = B * T * C * Ho
    xr = x.reshape(rows, kh * Wi)

    # Pre-flattened pooling matrix: S[r*Wi + w, wo] = 1 iff wo*kw <= w < (wo+1)*kw.
    w_idx = jnp.arange(kh * Wi, dtype=jnp.int32) % Wi
    sel = (w_idx[:, None] // kw) == jnp.arange(Wo, dtype=jnp.int32)[None, :]
    pool_mat = sel.astype(xr.dtype)

    # Row-block size: multiple of 8 (sublane) unless it covers all rows.
    rblk = rows if rows <= row_block else max(8, (row_block // 8) * 8)
    grid = (pl.cdiv(rows, rblk),)

    kernel = functools.partial(_avgpool_kernel, inv_area=1.0 / float(kh * kw))

    out = pl.pallas_call(
        kernel,
        out_shape=jax.ShapeDtypeStruct((rows, Wo), xr.dtype),
        grid_spec=pltpu.PrefetchScalarGridSpec(
            num_scalar_prefetch=0,
            grid=grid,
            in_specs=[
                pl.BlockSpec((rblk, kh * Wi), lambda i: (i, 0)),
                pl.BlockSpec((kh * Wi, Wo), lambda i: (0, 0)),  # resident weight
            ],
            out_specs=pl.BlockSpec((rblk, Wo), lambda i: (i, 0)),
        ),
        compiler_params=pltpu.CompilerParams(
            dimension_semantics=("parallel",)),
    )(xr, pool_mat)

    # Free reshape back to the PyTorch output layout.
    return out.reshape(B, T, C, Ho, Wo)


def _reference(x_btchw, kh, kw):
    # Pure-JAX reference: per-frame average pooling via reduce_window.
    B, T, C, H, W = x_btchw.shape
    xr = x_btchw.reshape(B * T, C, H, W)
    s = jax.lax.reduce_window(
        xr, jnp.zeros((), xr.dtype), jax.lax.add,
        (1, 1, kh, kw), (1, 1, kh, kw), "VALID")
    y = s / float(kh * kw)
    return y.reshape(B, T, C, y.shape[-2], y.shape[-1])


if __name__ == "__main__":
    B, T, C, H, W = 2, 8, 4, 16, 16
    kh = kw = 2

    key = jax.random.PRNGKey(0)
    x = jax.random.normal(key, (B, T, C, H, W), dtype=jnp.float32)

    y = avg_pool2d_ext_forward(x, kernel_size=(kh, kw))
    y = jax.block_until_ready(y)

    y_ref = _reference(x, kh, kw)
    assert y.shape == (B, T, C, H // kh, W // kw), y.shape
    assert jnp.allclose(y, y_ref, atol=1e-5, rtol=1e-5), "mismatch vs JAX reference"

    print("KERNEL_OK")
</pallas_src>

<mosaic_0001>
module attributes {stable_mosaic.version = 11 : i64} {
  func.func @_avgpool_kernel(%arg0: i32, %arg1: memref<512x32xf32, #tpu.memory_space<vmem>>, %arg2: memref<32x8xf32, #tpu.memory_space<vmem>>, %arg3: memref<512x8xf32, #tpu.memory_space<vmem>>) attributes {dimension_semantics = [#tpu.dimension_semantics<parallel>], iteration_bounds = array<i64: 1>, scalar_prefetch = 0 : i64, scratch_operands = 0 : i64, tpu.core_type = #tpu.core_type<tc>, window_params = [{transform_indices = @transform_0, window_bounds = array<i64: 512, 32>}, {pipeline_mode = #tpu.pipeline_mode<synchronous>, transform_indices = @transform_1, window_bounds = array<i64: 32, 8>}, {transform_indices = @transform_2, window_bounds = array<i64: 512, 8>}]} {
    %c0 = arith.constant 0 : index
    %c0_0 = arith.constant 0 : index
    %0 = vector.load %arg1[%c0, %c0_0] : memref<512x32xf32, #tpu.memory_space<vmem>>, vector<512x32xf32>
    %c0_1 = arith.constant 0 : index
    %c0_2 = arith.constant 0 : index
    %1 = vector.load %arg2[%c0_1, %c0_2] : memref<32x8xf32, #tpu.memory_space<vmem>>, vector<32x8xf32>
    %cst = arith.constant dense<0.000000e+00> : vector<512x8xf32>
    %2 = tpu.matmul %0, %1, %cst {dimension_numbers = #tpu.dot_dimension_numbers<[1], [0], [0], [1], [0, 0, 1, 1], [], []>} : vector<512x32xf32>, vector<32x8xf32>, vector<512x8xf32> -> vector<512x8xf32>
    %cst_3 = arith.constant 2.500000e-01 : f32
    %3 = vector.broadcast %cst_3 : f32 to vector<512x8xf32>
    %4 = arith.mulf %2, %3 : vector<512x8xf32>
    %c0_4 = arith.constant 0 : index
    %c0_5 = arith.constant 0 : index
    %5 = vector.load %arg3[%c0_4, %c0_5] : memref<512x8xf32, #tpu.memory_space<vmem>>, vector<512x8xf32>
    tpu.vector_store %arg3[%c0_4, %c0_5], %4 {strides = array<i32>} : memref<512x8xf32, #tpu.memory_space<vmem>>, vector<512x8xf32>,
    return
  }
  func.func @transform_0(%arg0: i32) -> (i32, i32) {
    %c0_i32 = arith.constant 0 : i32
    %c0_i32_0 = arith.constant 0 : i32
    return %arg0, %c0_i32 : i32, i32
  }
  func.func @transform_1(%arg0: i32) -> (i32, i32) {
    %c0_i32 = arith.constant 0 : i32
    %c0_i32_0 = arith.constant 0 : i32
    %c0_i32_1 = arith.constant 0 : i32
    return %c0_i32, %c0_i32_0 : i32, i32
  }
  func.func @transform_2(%arg0: i32) -> (i32, i32) {
    %c0_i32 = arith.constant 0 : i32
    %c0_i32_0 = arith.constant 0 : i32
    return %arg0, %c0_i32 : i32, i32
  }
}

</mosaic_0001>

<bundles_post_ra>
// kernel: tpu_custom_call.1
= control target key start
LH: loop header
LB: loop body
LE: loop exit
PB: predicated region body
PF: predicated region fallthrough
CT: control target
= control target key end

     0   :  { %vm79_vm0 = vcmask 261120   ;;  %vm721_vm1 = vcmask 64512   ;;  %s1577_s1 = inlined_call_operand.vmem [shape: f32[32,8], index: 1, kind: input, shape index: {}]   ;;  %s1578_s0 = inlined_call_operand.vmem [shape: f32[512,32], index: 0, kind: input, shape index: {}]   ;;  %s1579_s2 = inlined_call_operand.vmem [shape: f32[512,8], index: 2, kind: output, shape index: {}]  }
   0x1   :  { %v75_v0 = vld [vmem:[%s1577_s1] sm:$0xff]  ;;  %v76_v1 = vld [vmem:[%s1577_s1 + $0x8] sm:$0xff]  ;;  %v77_v2 = vld [vmem:[%s1577_s1 + $0x10] sm:$0xff] }
   0x2   :  { %v1026_v3 = vpack.c.bf16 %v76_v1, %v75_v0  ;;  %v78_v4 = vld [vmem:[%s1577_s1 + $0x18] sm:$0xff]  ;;  %v11_v5 = vld [vmem:[%s1578_s0] sm:$0xff]  ;;  %v12_v8 = vld [vmem:[%s1578_s0 + $0x8] sm:$0xff] }
   0x3   :  { %v43_v6 = vld [vmem:[%s1578_s0 + $0x100] sm:$0xff]  ;;  %v1030_v7 = vpack.c.bf16 %v78_v4, %v77_v2  ;;  %930 = vmatprep.mubr.msk.f32.mxu0 %vm79_vm0, %v11_v5  ;;  %v44_v9 = vld [vmem:[%s1578_s0 + $0x108] sm:$0xff]  ;;  %v13_v10 = vld [vmem:[%s1578_s0 + $0x10] sm:$0xff] }
   0x4   :  { %978 = vmatprep.mubr.msk.f32.mxu1 %vm79_vm0, %v43_v6  ;;  %1027 = vmatprep.subr.bf16.mxu0 %v1026_v3  ;;  %v45_v11 = vld [vmem:[%s1578_s0 + $0x110] sm:$0xff]  ;;  %v14_v12 = vld [vmem:[%s1578_s0 + $0x18] sm:$0xff]  ;;  %v15_v14 = vld [vmem:[%s1578_s0 + $0x20] sm:$0xff] }
   0x5   :  { %1034 = vmatprep.subr.bf16.mxu1 %v1026_v3  ;;  %1029 = vmatpush3.bf16.msra.mxu0 %v1026_v3  ;;  %v46_v13 = vld [vmem:[%s1578_s0 + $0x118] sm:$0xff]  ;;  %v47_v15 = vld [vmem:[%s1578_s0 + $0x120] sm:$0xff]  ;;  %v16_v16 = vld [vmem:[%s1578_s0 + $0x28] sm:$0xff] }
   0x6   :  { %1036 = vmatpush3.bf16.msra.mxu1 %v1026_v3  ;;  %1031 = vmatprep.subr.bf16.mxu0 %v1030_v7  ;;  %v48_v17 = vld [vmem:[%s1578_s0 + $0x128] sm:$0xff]  ;;  %v17_v18 = vld [vmem:[%s1578_s0 + $0x30] sm:$0xff]  ;;  %v18_v20 = vld [vmem:[%s1578_s0 + $0x38] sm:$0xff] }
   0x7   :  { %1035 = vmatprep.subr.bf16.mxu1 %v1030_v7  ;;  %v49_v19 = vld [vmem:[%s1578_s0 + $0x130] sm:$0xff]  ;;  %v50_v21 = vld [vmem:[%s1578_s0 + $0x138] sm:$0xff]  ;;  %v19_v22 = vld [vmem:[%s1578_s0 + $0x40] sm:$0xff] }
   0x8   :  { %v51_v23 = vld [vmem:[%s1578_s0 + $0x140] sm:$0xff]  ;;  %v20_v24 = vld [vmem:[%s1578_s0 + $0x48] sm:$0xff]  ;;  %v21_v26 = vld [vmem:[%s1578_s0 + $0x50] sm:$0xff] }
   0x9   :  { %1033 = vmatpush3.bf16.msra.mxu0 %v1030_v7  ;;  %v52_v25 = vld [vmem:[%s1578_s0 + $0x148] sm:$0xff]  ;;  %v53_v27 = vld [vmem:[%s1578_s0 + $0x150] sm:$0xff]  ;;  %v22_v28 = vld [vmem:[%s1578_s0 + $0x58] sm:$0xff] }
   0xa   :  { %1037 = vmatpush3.bf16.msra.mxu1 %v1030_v7  ;;  %v54_v29 = vld [vmem:[%s1578_s0 + $0x158] sm:$0xff]  ;;  %v23_v30 = vld [vmem:[%s1578_s0 + $0x60] sm:$0xff]  ;;  %v24_v32 = vld [vmem:[%s1578_s0 + $0x68] sm:$0xff] }
   0xb   :  { %v55_v31 = vld [vmem:[%s1578_s0 + $0x160] sm:$0xff]  ;;  %v56_v33 = vld [vmem:[%s1578_s0 + $0x168] sm:$0xff]  ;;  %v25_v34 = vld [vmem:[%s1578_s0 + $0x70] sm:$0xff] }
   0xc   :  { %931 = vmatmul.mubr.msk.f32.vlgmr.msra.gmra.mrb[0].mxu0 %vm79_vm0, %v12_v8  ;;  %v57_v35 = vld [vmem:[%s1578_s0 + $0x170] sm:$0xff]  ;;  %v26_v36 = vld [vmem:[%s1578_s0 + $0x78] sm:$0xff]  ;;  %v27_v38 = vld [vmem:[%s1578_s0 + $0x80] sm:$0xff] }
   0xd   :  { %979 = vmatmul.mubr.msk.f32.vlgmr.msra.gmra.mrb[0].mxu1 %vm79_vm0, %v44_v9  ;;  %933 = vmatprep.mubr.msk.f32.mxu0 %vm79_vm0, %v13_v10  ;;  %v58_v37 = vld [vmem:[%s1578_s0 + $0x178] sm:$0xff]  ;;  %v59_v39 = vld [vmem:[%s1578_s0 + $0x180] sm:$0xff]  ;;  %v28_v40 = vld [vmem:[%s1578_s0 + $0x88] sm:$0xff] }
   0xe   :  { %981 = vmatprep.mubr.msk.f32.mxu1 %vm79_vm0, %v45_v11  ;;  %v60_v41 = vld [vmem:[%s1578_s0 + $0x188] sm:$0xff]  ;;  %v29_v42 = vld [vmem:[%s1578_s0 + $0x90] sm:$0xff]  ;;  %v30_v44 = vld [vmem:[%s1578_s0 + $0x98] sm:$0xff] }
   0xf   :  { %v61_v43 = vld [vmem:[%s1578_s0 + $0x190] sm:$0xff]  ;;  %v62_v45 = vld [vmem:[%s1578_s0 + $0x198] sm:$0xff]  ;;  %v31_v46 = vld [vmem:[%s1578_s0 + $0xa0] sm:$0xff] }
  0x10   :  { %934 = vmatmul.mubr.msk.f32.gmra.mrb[2].mxu0 %vm79_vm0, %v14_v12  ;;  %v63_v47 = vld [vmem:[%s1578_s0 + $0x1a0] sm:$0xff]  ;;  %v32_v48 = vld [vmem:[%s1578_s0 + $0xa8] sm:$0xff]  ;;  %v33_v50 = vld [vmem:[%s1578_s0 + $0xb0] sm:$0xff] }
  0x11   :  { %982 = vmatmul.mubr.msk.f32.gmra.mrb[2].mxu1 %vm79_vm0, %v46_v13  ;;  %936 = vmatprep.mubr.msk.f32.mxu0 %vm79_vm0, %v15_v14  ;;  %v64_v49 = vld [vmem:[%s1578_s0 + $0x1a8] sm:$0xff]  ;;  %v65_v51 = vld [vmem:[%s1578_s0 + $0x1b0] sm:$0xff]  ;;  %v34_v52 = vld [vmem:[%s1578_s0 + $0xb8] sm:$0xff] }
  0x12   :  { %984 = vmatprep.mubr.msk.f32.mxu1 %vm79_vm0, %v47_v15  ;;  %v66_v53 = vld [vmem:[%s1578_s0 + $0x1b8] sm:$0xff]  ;;  %v35_v54 = vld [vmem:[%s1578_s0 + $0xc0] sm:$0xff]  ;;  %v36_v56 = vld [vmem:[%s1578_s0 + $0xc8] sm:$0xff] }
  0x13   :  { %v67_v55 = vld [vmem:[%s1578_s0 + $0x1c0] sm:$0xff]  ;;  %v68_v57 = vld [vmem:[%s1578_s0 + $0x1c8] sm:$0xff]  ;;  %v37_v58 = vld [vmem:[%s1578_s0 + $0xd0] sm:$0xff] }
  0x14   :  { %937 = vmatmul.mubr.msk.f32.gmra.mrb[4].mxu0 %vm79_vm0, %v16_v16  ;;  %v69_v59 = vld [vmem:[%s1578_s0 + $0x1d0] sm:$0xff]  ;;  %v38_v60 = vld [vmem:[%s1578_s0 + $0xd8] sm:$0xff]  ;;  %v39_v62 = vld [vmem:[%s1578_s0 + $0xe0] sm:$0xff] }
  0x15   :  { %985 = vmatmul.mubr.msk.f32.gmra.mrb[4].mxu1 %vm79_vm0, %v48_v17  ;;  %939 = vmatprep.mubr.msk.f32.mxu0 %vm79_vm0, %v17_v18  ;;  %v70_v61 = vld [vmem:[%s1578_s0 + $0x1d8] sm:$0xff]  ;;  %v71_v63 = vld [vmem:[%s1578_s0 + $0x1e0] sm:$0xff]  ;;  %v40_v0 = vld [vmem:[%s1578_s0 + $0xe8] sm:$0xff] }
  0x16   :  { %987 = vmatprep.mubr.msk.f32.mxu1 %vm79_vm0, %v49_v19  ;;  %v72_v1 = vld [vmem:[%s1578_s0 + $0x1e8] sm:$0xff]  ;;  %v41_v2 = vld [vmem:[%s1578_s0 + $0xf0] sm:$0xff]  ;;  %v42_v4 = vld [vmem:[%s1578_s0 + $0xf8] sm:$0xff] }
  0x17   :  { %v73_v3 = vld [vmem:[%s1578_s0 + $0x1f0] sm:$0xff]  ;;  %v74_v5 = vld [vmem:[%s1578_s0 + $0x1f8] sm:$0xff] }
  0x18   :  { %940 = vmatmul.mubr.msk.f32.gmra.mrb[6].mxu0 %vm79_vm0, %v18_v20 }
  0x19   :  { %988 = vmatmul.mubr.msk.f32.gmra.mrb[6].mxu1 %vm79_vm0, %v50_v21  ;;  %942 = vmatprep.mubr.msk.f32.mxu0 %vm79_vm0, %v19_v22 }
  0x1a   :  { %990 = vmatprep.mubr.msk.f32.mxu1 %vm79_vm0, %v51_v23 }
  0x1c   :  { %943 = vmatmul.mubr.msk.f32.gmra.mrb[8].mxu0 %vm79_vm0, %v20_v24 }
  0x1d   :  { %991 = vmatmul.mubr.msk.f32.gmra.mrb[8].mxu1 %vm79_vm0, %v52_v25  ;;  %945 = vmatprep.mubr.msk.f32.mxu0 %vm79_vm0, %v21_v26 }
  0x1e   :  { %993 = vmatprep.mubr.msk.f32.mxu1 %vm79_vm0, %v53_v27 }
  0x20   :  { %946 = vmatmul.mubr.msk.f32.gmra.mrb[10].mxu0 %vm79_vm0, %v22_v28 }
  0x21   :  { %994 = vmatmul.mubr.msk.f32.gmra.mrb[10].mxu1 %vm79_vm0, %v54_v29  ;;  %948 = vmatprep.mubr.msk.f32.mxu0 %vm79_vm0, %v23_v30 }
  0x22   :  { %996 = vmatprep.mubr.msk.f32.mxu1 %vm79_vm0, %v55_v31 }
  0x24   :  { %949 = vmatmul.mubr.msk.f32.gmra.mrb[12].mxu0 %vm79_vm0, %v24_v32 }
  0x25   :  { %997 = vmatmul.mubr.msk.f32.gmra.mrb[12].mxu1 %vm79_vm0, %v56_v33  ;;  %951 = vmatprep.mubr.msk.f32.mxu0 %vm79_vm0, %v25_v34 }
  0x26   :  { %999 = vmatprep.mubr.msk.f32.mxu1 %vm79_vm0, %v57_v35 }
  0x28   :  { %952 = vmatmul.mubr.msk.f32.gmra.mrb[14].mxu0 %vm79_vm0, %v26_v36 }
  0x29   :  { %1000 = vmatmul.mubr.msk.f32.gmra.mrb[14].mxu1 %vm79_vm0, %v58_v37  ;;  %954 = vmatprep.mubr.msk.f32.mxu0 %vm79_vm0, %v27_v38 }
  0x2a   :  { %1002 = vmatprep.mubr.msk.f32.mxu1 %vm79_vm0, %v59_v39 }
  0x2c   :  { %955 = vmatmul.mubr.msk.f32.gmra.mrb[16].mxu0 %vm79_vm0, %v28_v40 }
  0x2d   :  { %1003 = vmatmul.mubr.msk.f32.gmra.mrb[16].mxu1 %vm79_vm0, %v60_v41  ;;  %957 = vmatprep.mubr.msk.f32.mxu0 %vm79_vm0, %v29_v42 }
  0x2e   :  { %1005 = vmatprep.mubr.msk.f32.mxu1 %vm79_vm0, %v61_v43 }
  0x30   :  { %958 = vmatmul.mubr.msk.f32.gmra.mrb[18].mxu0 %vm79_vm0, %v30_v44 }
  0x31   :  { %1006 = vmatmul.mubr.msk.f32.gmra.mrb[18].mxu1 %vm79_vm0, %v62_v45  ;;  %960 = vmatprep.mubr.msk.f32.mxu0 %vm79_vm0, %v31_v46 }
  0x32   :  { %1008 = vmatprep.mubr.msk.f32.mxu1 %vm79_vm0, %v63_v47 }
  0x34   :  { %961 = vmatmul.mubr.msk.f32.gmra.mrb[20].mxu0 %vm79_vm0, %v32_v48 }
  0x35   :  { %1009 = vmatmul.mubr.msk.f32.gmra.mrb[20].mxu1 %vm79_vm0, %v64_v49  ;;  %963 = vmatprep.mubr.msk.f32.mxu0 %vm79_vm0, %v33_v50 }
  0x36   :  { %1011 = vmatprep.mubr.msk.f32.mxu1 %vm79_vm0, %v65_v51 }
  0x38   :  { %964 = vmatmul.mubr.msk.f32.gmra.mrb[22].mxu0 %vm79_vm0, %v34_v52 }
  0x39   :  { %1012 = vmatmul.mubr.msk.f32.gmra.mrb[22].mxu1 %vm79_vm0, %v66_v53  ;;  %966 = vmatprep.mubr.msk.f32.mxu0 %vm79_vm0, %v35_v54 }
  0x3a   :  { %1014 = vmatprep.mubr.msk.f32.mxu1 %vm79_vm0, %v67_v55 }
  0x3c   :  { %967 = vmatmul.mubr.msk.f32.gmra.mrb[24].mxu0 %vm79_vm0, %v36_v56 }
  0x3d   :  { %1015 = vmatmul.mubr.msk.f32.gmra.mrb[24].mxu1 %vm79_vm0, %v68_v57  ;;  %969 = vmatprep.mubr.msk.f32.mxu0 %vm79_vm0, %v37_v58 }
  0x3e   :  { %1017 = vmatprep.mubr.msk.f32.mxu1 %vm79_vm0, %v69_v59 }
  0x40   :  { %970 = vmatmul.mubr.msk.f32.gmra.mrb[26].mxu0 %vm79_vm0, %v38_v60 }
  0x41   :  { %1018 = vmatmul.mubr.msk.f32.gmra.mrb[26].mxu1 %vm79_vm0, %v70_v61  ;;  %972 = vmatprep.mubr.msk.f32.mxu0 %vm79_vm0, %v39_v62 }
  0x42   :  { %1020 = vmatprep.mubr.msk.f32.mxu1 %vm79_vm0, %v71_v63 }
  0x44   :  { %973 = vmatmul.mubr.msk.f32.gmra.mrb[28].mxu0 %vm79_vm0, %v40_v0 }
  0x45   :  { %1021 = vmatmul.mubr.msk.f32.gmra.mrb[28].mxu1 %vm79_vm0, %v72_v1  ;;  %975 = vmatprep.mubr.msk.f32.mxu0 %vm79_vm0, %v41_v2 }
  0x46   :  { %1023 = vmatprep.mubr.msk.f32.mxu1 %vm79_vm0, %v73_v3 }
  0x48   :  { %976 = vmatmul.mubr.msk.f32.gmra.mrb[30].mxu0 %vm79_vm0, %v42_v4 }
  0x49   :  { %1024 = vmatmul.mubr.msk.f32.gmra.mrb[30].mxu1 %vm79_vm0, %v74_v5 }
  0xdf   :  { %v932_v6 = vpop.f32.mrb[0].mxu0 }
  0xe0   :  { %v980_v7 = vpop.f32.mrb[0].mxu1  ;;  %v658_v8 = vmul.f32 0.25, %v932_v6  ;;  %v338_v10 = vpop.f32.mrb[1].mxu0 }
  0xe1   :  { %v690_v9 = vmul.f32 0.25, %v980_v7  ;;  %v498_v11 = vpop.f32.mrb[1].mxu1  ;;  %v657_v12 = vmul.f32 0.25, %v338_v10 }
  0xe2   :  { %v689_v13 = vmul.f32 0.25, %v498_v11  ;;  %723 = vst.msk [vmem:[%s1579_s2 + $0x8] sm:$0xff] %vm721_vm1, %v658_v8 }
  0xe3   :  { %755 = vst.msk [vmem:[%s1579_s2 + $0x108] sm:$0xff] %vm721_vm1, %v690_v9  ;;  %722 = vst.msk [vmem:[%s1579_s2] sm:$0xff] %vm721_vm1, %v657_v12  ;;  %v935_v14 = vpop.f32.mrb[2].mxu0 }
  0xe4   :  { %754 = vst.msk [vmem:[%s1579_s2 + $0x100] sm:$0xff] %vm721_vm1, %v689_v13  ;;  %v983_v15 = vpop.f32.mrb[2].mxu1  ;;  %v660_v16 = vmul.f32 0.25, %v935_v14  ;;  %v348_v18 = vpop.f32.mrb[3].mxu0 }
  0xe5   :  { %v692_v17 = vmul.f32 0.25, %v983_v15  ;;  %v508_v19 = vpop.f32.mrb[3].mxu1  ;;  %v659_v20 = vmul.f32 0.25, %v348_v18 }
  0xe6   :  { %v691_v21 = vmul.f32 0.25, %v508_v19  ;;  %725 = vst.msk [vmem:[%s1579_s2 + $0x18] sm:$0xff] %vm721_vm1, %v660_v16 }
  0xe7   :  { %757 = vst.msk [vmem:[%s1579_s2 + $0x118] sm:$0xff] %vm721_vm1, %v692_v17  ;;  %724 = vst.msk [vmem:[%s1579_s2 + $0x10] sm:$0xff] %vm721_vm1, %v659_v20  ;;  %v938_v22 = vpop.f32.mrb[4].mxu0 }
  0xe8   :  { %756 = vst.msk [vmem:[%s1579_s2 + $0x110] sm:$0xff] %vm721_vm1, %v691_v21  ;;  %v986_v23 = vpop.f32.mrb[4].mxu1  ;;  %v662_v24 = vmul.f32 0.25, %v938_v22  ;;  %v358_v26 = vpop.f32.mrb[5].mxu0 }
  0xe9   :  { %v694_v25 = vmul.f32 0.25, %v986_v23  ;;  %v518_v27 = vpop.f32.mrb[5].mxu1  ;;  %v661_v28 = vmul.f32 0.25, %v358_v26 }
  0xea   :  { %v693_v29 = vmul.f32 0.25, %v518_v27  ;;  %727 = vst.msk [vmem:[%s1579_s2 + $0x28] sm:$0xff] %vm721_vm1, %v662_v24 }
  0xeb   :  { %759 = vst.msk [vmem:[%s1579_s2 + $0x128] sm:$0xff] %vm721_vm1, %v694_v25  ;;  %726 = vst.msk [vmem:[%s1579_s2 + $0x20] sm:$0xff] %vm721_vm1, %v661_v28  ;;  %v941_v30 = vpop.f32.mrb[6].mxu0 }
  0xec   :  { %758 = vst.msk [vmem:[%s1579_s2 + $0x120] sm:$0xff] %vm721_vm1, %v693_v29  ;;  %v989_v31 = vpop.f32.mrb[6].mxu1  ;;  %v664_v32 = vmul.f32 0.25, %v941_v30  ;;  %v368_v34 = vpop.f32.mrb[7].mxu0 }
  0xed   :  { %v696_v33 = vmul.f32 0.25, %v989_v31  ;;  %v528_v35 = vpop.f32.mrb[7].mxu1  ;;  %v663_v36 = vmul.f32 0.25, %v368_v34 }
  0xee   :  { %v695_v37 = vmul.f32 0.25, %v528_v35  ;;  %729 = vst.msk [vmem:[%s1579_s2 + $0x38] sm:$0xff] %vm721_vm1, %v664_v32 }
  0xef   :  { %761 = vst.msk [vmem:[%s1579_s2 + $0x138] sm:$0xff] %vm721_vm1, %v696_v33  ;;  %728 = vst.msk [vmem:[%s1579_s2 + $0x30] sm:$0xff] %vm721_vm1, %v663_v36  ;;  %v944_v38 = vpop.f32.mrb[8].mxu0 }
  0xf0   :  { %760 = vst.msk [vmem:[%s1579_s2 + $0x130] sm:$0xff] %vm721_vm1, %v695_v37  ;;  %v992_v39 = vpop.f32.mrb[8].mxu1  ;;  %v666_v40 = vmul.f32 0.25, %v944_v38  ;;  %v378_v42 = vpop.f32.mrb[9].mxu0 }
  0xf1   :  { %v698_v41 = vmul.f32 0.25, %v992_v39  ;;  %v538_v43 = vpop.f32.mrb[9].mxu1  ;;  %v665_v44 = vmul.f32 0.25, %v378_v42 }
  0xf2   :  { %v697_v45 = vmul.f32 0.25, %v538_v43  ;;  %731 = vst.msk [vmem:[%s1579_s2 + $0x48] sm:$0xff] %vm721_vm1, %v666_v40 }
  0xf3   :  { %763 = vst.msk [vmem:[%s1579_s2 + $0x148] sm:$0xff] %vm721_vm1, %v698_v41  ;;  %730 = vst.msk [vmem:[%s1579_s2 + $0x40] sm:$0xff] %vm721_vm1, %v665_v44  ;;  %v947_v46 = vpop.f32.mrb[10].mxu0 }
  0xf4   :  { %762 = vst.msk [vmem:[%s1579_s2 + $0x140] sm:$0xff] %vm721_vm1, %v697_v45  ;;  %v995_v47 = vpop.f32.mrb[10].mxu1  ;;  %v668_v48 = vmul.f32 0.25, %v947_v46  ;;  %v388_v50 = vpop.f32.mrb[11].mxu0 }
  0xf5   :  { %v700_v49 = vmul.f32 0.25, %v995_v47  ;;  %v548_v51 = vpop.f32.mrb[11].mxu1  ;;  %v667_v52 = vmul.f32 0.25, %v388_v50 }
  0xf6   :  { %v699_v53 = vmul.f32 0.25, %v548_v51  ;;  %733 = vst.msk [vmem:[%s1579_s2 + $0x58] sm:$0xff] %vm721_vm1, %v668_v48 }
  0xf7   :  { %765 = vst.msk [vmem:[%s1579_s2 + $0x158] sm:$0xff] %vm721_vm1, %v700_v49  ;;  %732 = vst.msk [vmem:[%s1579_s2 + $0x50] sm:$0xff] %vm721_vm1, %v667_v52  ;;  %v950_v54 = vpop.f32.mrb[12].mxu0 }
  0xf8   :  { %764 = vst.msk [vmem:[%s1579_s2 + $0x150] sm:$0xff] %vm721_vm1, %v699_v53  ;;  %v998_v55 = vpop.f32.mrb[12].mxu1  ;;  %v670_v56 = vmul.f32 0.25, %v950_v54  ;;  %v398_v58 = vpop.f32.mrb[13].mxu0 }
  0xf9   :  { %v702_v57 = vmul.f32 0.25, %v998_v55  ;;  %v558_v59 = vpop.f32.mrb[13].mxu1  ;;  %v669_v60 = vmul.f32 0.25, %v398_v58 }
  0xfa   :  { %v701_v61 = vmul.f32 0.25, %v558_v59  ;;  %735 = vst.msk [vmem:[%s1579_s2 + $0x68] sm:$0xff] %vm721_vm1, %v670_v56 }
  0xfb   :  { %767 = vst.msk [vmem:[%s1579_s2 + $0x168] sm:$0xff] %vm721_vm1, %v702_v57  ;;  %734 = vst.msk [vmem:[%s1579_s2 + $0x60] sm:$0xff] %vm721_vm1, %v669_v60  ;;  %v953_v62 = vpop.f32.mrb[14].mxu0 }
  0xfc   :  { %766 = vst.msk [vmem:[%s1579_s2 + $0x160] sm:$0xff] %vm721_vm1, %v701_v61  ;;  %v1001_v63 = vpop.f32.mrb[14].mxu1  ;;  %v672_v0 = vmul.f32 0.25, %v953_v62  ;;  %v408_v2 = vpop.f32.mrb[15].mxu0 }
  0xfd   :  { %v704_v1 = vmul.f32 0.25, %v1001_v63  ;;  %v568_v3 = vpop.f32.mrb[15].mxu1  ;;  %v671_v4 = vmul.f32 0.25, %v408_v2 }
  0xfe   :  { %v703_v5 = vmul.f32 0.25, %v568_v3  ;;  %737 = vst.msk [vmem:[%s1579_s2 + $0x78] sm:$0xff] %vm721_vm1, %v672_v0 }
  0xff   :  { %769 = vst.msk [vmem:[%s1579_s2 + $0x178] sm:$0xff] %vm721_vm1, %v704_v1  ;;  %736 = vst.msk [vmem:[%s1579_s2 + $0x70] sm:$0xff] %vm721_vm1, %v671_v4  ;;  %v956_v6 = vpop.f32.mrb[16].mxu0 }
 0x100   :  { %768 = vst.msk [vmem:[%s1579_s2 + $0x170] sm:$0xff] %vm721_vm1, %v703_v5  ;;  %v1004_v7 = vpop.f32.mrb[16].mxu1  ;;  %v674_v8 = vmul.f32 0.25, %v956_v6  ;;  %v418_v10 = vpop.f32.mrb[17].mxu0 }
 0x101   :  { %v706_v9 = vmul.f32 0.25, %v1004_v7  ;;  %v578_v11 = vpop.f32.mrb[17].mxu1  ;;  %v673_v12 = vmul.f32 0.25, %v418_v10 }
 0x102   :  { %v705_v13 = vmul.f32 0.25, %v578_v11  ;;  %739 = vst.msk [vmem:[%s1579_s2 + $0x88] sm:$0xff] %vm721_vm1, %v674_v8 }
 0x103   :  { %771 = vst.msk [vmem:[%s1579_s2 + $0x188] sm:$0xff] %vm721_vm1, %v706_v9  ;;  %738 = vst.msk [vmem:[%s1579_s2 + $0x80] sm:$0xff] %vm721_vm1, %v673_v12  ;;  %v959_v14 = vpop.f32.mrb[18].mxu0 }
 0x104   :  { %770 = vst.msk [vmem:[%s1579_s2 + $0x180] sm:$0xff] %vm721_vm1, %v705_v13  ;;  %v1007_v15 = vpop.f32.mrb[18].mxu1  ;;  %v676_v16 = vmul.f32 0.25, %v959_v14  ;;  %v428_v18 = vpop.f32.mrb[19].mxu0 }
 0x105   :  { %v708_v17 = vmul.f32 0.25, %v1007_v15  ;;  %v588_v19 = vpop.f32.mrb[19].mxu1  ;;  %v675_v20 = vmul.f32 0.25, %v428_v18 }
 0x106   :  { %v707_v21 = vmul.f32 0.25, %v588_v19  ;;  %741 = vst.msk [vmem:[%s1579_s2 + $0x98] sm:$0xff] %vm721_vm1, %v676_v16 }
 0x107   :  { %773 = vst.msk [vmem:[%s1579_s2 + $0x198] sm:$0xff] %vm721_vm1, %v708_v17  ;;  %740 = vst.msk [vmem:[%s1579_s2 + $0x90] sm:$0xff] %vm721_vm1, %v675_v20  ;;  %v962_v22 = vpop.f32.mrb[20].mxu0 }
 0x108   :  { %772 = vst.msk [vmem:[%s1579_s2 + $0x190] sm:$0xff] %vm721_vm1, %v707_v21  ;;  %v1010_v23 = vpop.f32.mrb[20].mxu1  ;;  %v678_v24 = vmul.f32 0.25, %v962_v22  ;;  %v438_v26 = vpop.f32.mrb[21].mxu0 }
 0x109   :  { %v710_v25 = vmul.f32 0.25, %v1010_v23  ;;  %v598_v27 = vpop.f32.mrb[21].mxu1  ;;  %v677_v28 = vmul.f32 0.25, %v438_v26 }
 0x10a   :  { %v709_v29 = vmul.f32 0.25, %v598_v27  ;;  %743 = vst.msk [vmem:[%s1579_s2 + $0xa8] sm:$0xff] %vm721_vm1, %v678_v24 }
 0x10b   :  { %775 = vst.msk [vmem:[%s1579_s2 + $0x1a8] sm:$0xff] %vm721_vm1, %v710_v25  ;;  %742 = vst.msk [vmem:[%s1579_s2 + $0xa0] sm:$0xff] %vm721_vm1, %v677_v28  ;;  %v965_v30 = vpop.f32.mrb[22].mxu0 }
 0x10c   :  { %774 = vst.msk [vmem:[%s1579_s2 + $0x1a0] sm:$0xff] %vm721_vm1, %v709_v29  ;;  %v1013_v31 = vpop.f32.mrb[22].mxu1  ;;  %v680_v32 = vmul.f32 0.25, %v965_v30  ;;  %v448_v34 = vpop.f32.mrb[23].mxu0 }
 0x10d   :  { %v712_v33 = vmul.f32 0.25, %v1013_v31  ;;  %v608_v35 = vpop.f32.mrb[23].mxu1  ;;  %v679_v36 = vmul.f32 0.25, %v448_v34 }
 0x10e   :  { %v711_v37 = vmul.f32 0.25, %v608_v35  ;;  %745 = vst.msk [vmem:[%s1579_s2 + $0xb8] sm:$0xff] %vm721_vm1, %v680_v32 }
 0x10f   :  { %777 = vst.msk [vmem:[%s1579_s2 + $0x1b8] sm:$0xff] %vm721_vm1, %v712_v33  ;;  %744 = vst.msk [vmem:[%s1579_s2 + $0xb0] sm:$0xff] %vm721_vm1, %v679_v36  ;;  %v968_v38 = vpop.f32.mrb[24].mxu0 }
 0x110   :  { %776 = vst.msk [vmem:[%s1579_s2 + $0x1b0] sm:$0xff] %vm721_vm1, %v711_v37  ;;  %v1016_v39 = vpop.f32.mrb[24].mxu1  ;;  %v682_v40 = vmul.f32 0.25, %v968_v38  ;;  %v458_v42 = vpop.f32.mrb[25].mxu0 }
 0x111   :  { %v714_v41 = vmul.f32 0.25, %v1016_v39  ;;  %v618_v43 = vpop.f32.mrb[25].mxu1  ;;  %v681_v44 = vmul.f32 0.25, %v458_v42 }
 0x112   :  { %v713_v45 = vmul.f32 0.25, %v618_v43  ;;  %747 = vst.msk [vmem:[%s1579_s2 + $0xc8] sm:$0xff] %vm721_vm1, %v682_v40 }
 0x113   :  { %779 = vst.msk [vmem:[%s1579_s2 + $0x1c8] sm:$0xff] %vm721_vm1, %v714_v41  ;;  %746 = vst.msk [vmem:[%s1579_s2 + $0xc0] sm:$0xff] %vm721_vm1, %v681_v44  ;;  %v971_v46 = vpop.f32.mrb[26].mxu0 }
 0x114   :  { %778 = vst.msk [vmem:[%s1579_s2 + $0x1c0] sm:$0xff] %vm721_vm1, %v713_v45  ;;  %v1019_v47 = vpop.f32.mrb[26].mxu1  ;;  %v684_v48 = vmul.f32 0.25, %v971_v46  ;;  %v468_v50 = vpop.f32.mrb[27].mxu0 }
 0x115   :  { %v716_v49 = vmul.f32 0.25, %v1019_v47  ;;  %v628_v51 = vpop.f32.mrb[27].mxu1  ;;  %v683_v52 = vmul.f32 0.25, %v468_v50 }
 0x116   :  { %v715_v53 = vmul.f32 0.25, %v628_v51  ;;  %749 = vst.msk [vmem:[%s1579_s2 + $0xd8] sm:$0xff] %vm721_vm1, %v684_v48 }
 0x117   :  { %781 = vst.msk [vmem:[%s1579_s2 + $0x1d8] sm:$0xff] %vm721_vm1, %v716_v49  ;;  %748 = vst.msk [vmem:[%s1579_s2 + $0xd0] sm:$0xff] %vm721_vm1, %v683_v52  ;;  %v974_v54 = vpop.f32.mrb[28].mxu0 }
 0x118   :  { %780 = vst.msk [vmem:[%s1579_s2 + $0x1d0] sm:$0xff] %vm721_vm1, %v715_v53  ;;  %v1022_v55 = vpop.f32.mrb[28].mxu1  ;;  %v686_v56 = vmul.f32 0.25, %v974_v54  ;;  %v478_v58 = vpop.f32.mrb[29].mxu0 }
 0x119   :  { %v718_v57 = vmul.f32 0.25, %v1022_v55  ;;  %v638_v59 = vpop.f32.mrb[29].mxu1  ;;  %v685_v60 = vmul.f32 0.25, %v478_v58 }
 0x11a   :  { %v717_v61 = vmul.f32 0.25, %v638_v59  ;;  %751 = vst.msk [vmem:[%s1579_s2 + $0xe8] sm:$0xff] %vm721_vm1, %v686_v56 }
 0x11b   :  { %783 = vst.msk [vmem:[%s1579_s2 + $0x1e8] sm:$0xff] %vm721_vm1, %v718_v57  ;;  %750 = vst.msk [vmem:[%s1579_s2 + $0xe0] sm:$0xff] %vm721_vm1, %v685_v60  ;;  %v977_v62 = vpop.f32.mrb[30].mxu0 }
 0x11c   :  { %782 = vst.msk [vmem:[%s1579_s2 + $0x1e0] sm:$0xff] %vm721_vm1, %v717_v61  ;;  %v1025_v63 = vpop.f32.mrb[30].mxu1  ;;  %v688_v0 = vmul.f32 0.25, %v977_v62  ;;  %v488_v2 = vpop.f32.mrb[31].mxu0 }
 0x11d   :  { %v720_v1 = vmul.f32 0.25, %v1025_v63  ;;  %v648_v3 = vpop.f32.mrb[31].mxu1  ;;  %v687_v4 = vmul.f32 0.25, %v488_v2 }
 0x11e   :  { %v719_v5 = vmul.f32 0.25, %v648_v3  ;;  %753 = vst.msk [vmem:[%s1579_s2 + $0xf8] sm:$0xff] %vm721_vm1, %v688_v0 }
 0x11f   :  { %785 = vst.msk [vmem:[%s1579_s2 + $0x1f8] sm:$0xff] %vm721_vm1, %v720_v1  ;;  %752 = vst.msk [vmem:[%s1579_s2 + $0xf0] sm:$0xff] %vm721_vm1, %v687_v4 }
 0x120   :  { %784 = vst.msk [vmem:[%s1579_s2 + $0x1f0] sm:$0xff] %vm721_vm1, %v719_v5 }

</bundles_post_ra>
